<compile_context>
chip_gen: v5e
topology: v5e:2x2
jax: 0.10.0
libtpu: 0.0.40
codegen_flags: <defaults>
</compile_context>

<pallas_src>
import jax
import jax.numpy as jnp
from jax.experimental import pallas as pl
from jax.experimental.pallas import tpu as pltpu


def _round_up(x: int, m: int) -> int:
    return ((x + m - 1) // m) * m


def mf_kernel(ids_ref, uemb_ref, iemb_ref, out_ref):
    """One lane-dense batch tile of the matrix-factorization forward pass.

    ids_ref  : (1, 2, TB) int32      row 0 = user ids, row 1 = item ids (batch on lanes)
    uemb_ref : (F+2, U_pad)          augmented/transposed user table (resident VMEM)
    iemb_ref : (F+2, I_pad)          augmented/transposed item table (resident VMEM)
    out_ref  : (1, 1, TB) float32    predictions (batch on lanes)
    """
    n_users = uemb_ref.shape[1]
    n_items = iemb_ref.shape[1]
    tb = ids_ref.shape[-1]

    ids = ids_ref[0]                                             # (2, TB) int32
    uids = ids[:1]                                               # (1, TB)
    iids = ids[1:]                                               # (1, TB)

    # One-hot gather masks: entities on sublanes, batch on lanes.  0/1 are exact
    # in bf16, so casting to the (bf16) table dtype loses nothing.
    u_onehot = (jax.lax.broadcasted_iota(jnp.int32, (n_users, tb), 0)
                == uids).astype(uemb_ref.dtype)                  # (U_pad, TB)
    i_onehot = (jax.lax.broadcasted_iota(jnp.int32, (n_items, tb), 0)
                == iids).astype(iemb_ref.dtype)                  # (I_pad, TB)

    # MXU gathers: (F+2, U_pad) @ (U_pad, TB) -> (F+2, TB); f32 accumulation.
    ue = jnp.dot(uemb_ref[...], u_onehot, preferred_element_type=jnp.float32)
    ie = jnp.dot(iemb_ref[...], i_onehot, preferred_element_type=jnp.float32)

    # Augmented contraction == emb dot + user_bias + item_bias + global_bias.
    pred = jnp.sum(ue * ie, axis=0, keepdims=True)               # (1, TB) f32
    out_ref[0] = pred.astype(out_ref.dtype)


def matrix_factorization_forward(user_ids, item_ids, params, *, tile_b=512,
                                 table_dtype=jnp.bfloat16):
    """Pallas equivalent of MatrixFactorization.forward.

    table_dtype=jnp.bfloat16 (default) halves table VMEM/DMA and runs MXU-native;
    accumulation stays float32.  Use table_dtype=jnp.float32 for a bit-accurate
    debug path against a float32 reference.
    """
    f32 = jnp.float32
    user_emb = params["user_emb"].astype(f32)                    # (U, F)
    item_emb = params["item_emb"].astype(f32)                    # (I, F)
    user_bias = params["user_bias"].astype(f32)                  # (U, 1)
    item_bias = params["item_bias"].astype(f32)                  # (I, 1)
    global_bias = params["global_bias"].astype(f32).reshape(1, 1)

    n_users, n_factors = user_emb.shape
    n_items = item_emb.shape[0]
    f_aug = n_factors + 2

    # Transposed + bias-augmented tables; global bias folded into the item bias row.
    user_aug = jnp.concatenate(
        [user_emb.T, user_bias.T, jnp.ones((1, n_users), f32)], axis=0)
    item_aug = jnp.concatenate(
        [item_emb.T, jnp.ones((1, n_items), f32), (item_bias + global_bias).T], axis=0)

    # Pad entity axis (table lanes / one-hot sublanes) to a multiple of 128 for fully
    # aligned MXU tiles.  Padded columns are zero and never selected by valid ids.
    u_pad = _round_up(n_users, 128)
    i_pad = _round_up(n_items, 128)
    user_aug = jnp.pad(user_aug, ((0, 0), (0, u_pad - n_users))).astype(table_dtype)
    item_aug = jnp.pad(item_aug, ((0, 0), (0, i_pad - n_items))).astype(table_dtype)

    # Lane-dense batch tiling: TB a multiple of 128 (cap tile_b, default 512), and
    # aim for >=2 grid tiles whenever the batch allows so v7x's 2 TCs both get work.
    b = int(user_ids.shape[0])
    tile_b = max(128, (int(tile_b) // 128) * 128)
    lane_blocks = pl.cdiv(b, 128)
    tile_b = min(tile_b, 128 * max(1, lane_blocks // 2))
    b_pad = _round_up(b, tile_b)
    num_tiles = b_pad // tile_b

    def prep_ids(ids):
        ids = ids.reshape(-1).astype(jnp.int32)
        ids = jnp.pad(ids, (0, b_pad - b))       # pad with valid id 0 (rows discarded)
        return ids.reshape(num_tiles, 1, tile_b)

    # Pack user/item ids into one (tiles, 2, TB) array: halves tiny per-tile DMAs.
    ids3 = jnp.concatenate([prep_ids(user_ids), prep_ids(item_ids)], axis=1)

    # VMEM budget: single-buffered resident tables + one-hot/ue/ie intermediates +
    # double-buffered id/out tiles + headroom; capped at ~85% of this chip's VMEM.
    itemsize = jnp.dtype(table_dtype).itemsize
    tbl_bytes = (user_aug.size + item_aug.size) * itemsize
    onehot_bytes = (u_pad + i_pad) * tile_b * itemsize
    acc_bytes = 2 * _round_up(f_aug, 8) * tile_b * 4
    io_bytes = 2 * (2 * tile_b * 4 + tile_b * 4)
    want = tbl_bytes + onehot_bytes + acc_bytes + io_bytes + (8 << 20)
    try:
        vmem_cap = int(getattr(pltpu.get_tpu_info(), "vmem_capacity_bytes",
                               64 * 1024 * 1024))
    except Exception:  # pragma: no cover - conservative fallback
        vmem_cap = 64 * 1024 * 1024
    vmem_limit = int(max(1 << 20, min(int(0.85 * vmem_cap), want)))

    out = pl.pallas_call(
        mf_kernel,
        out_shape=jax.ShapeDtypeStruct((num_tiles, 1, tile_b), jnp.float32),
        grid=(num_tiles,),
        in_specs=[
            pl.BlockSpec((1, 2, tile_b), lambda i: (i, 0, 0)),          # packed id tile
            pl.BlockSpec(memory_space=pltpu.MemorySpace.VMEM),          # user table (resident, 1 buffer)
            pl.BlockSpec(memory_space=pltpu.MemorySpace.VMEM),          # item table (resident, 1 buffer)
        ],
        out_specs=pl.BlockSpec((1, 1, tile_b), lambda i: (i, 0, 0)),
        compiler_params=pltpu.CompilerParams(
            dimension_semantics=("parallel",),
            vmem_limit_bytes=vmem_limit),
    )(ids3, user_aug, item_aug)

    # (num_tiles, 1, TB) -> (B,)  (matches torch's squeezed (B,) prediction)
    return out.reshape(b_pad)[:b]


def init_params(key, num_users, num_items, num_factors=20):
    k_u, k_i = jax.random.split(key, 2)
    return {
        # nn.init.normal_(std=0.1)
        "user_emb": 0.1 * jax.random.normal(k_u, (num_users, num_factors), jnp.float32),
        "item_emb": 0.1 * jax.random.normal(k_i, (num_items, num_factors), jnp.float32),
        # nn.init.zeros_
        "user_bias": jnp.zeros((num_users, 1), jnp.float32),
        "item_bias": jnp.zeros((num_items, 1), jnp.float32),
        "global_bias": jnp.zeros((1,), jnp.float32),
    }


def reference_forward(user_ids, item_ids, params):
    ue = params["user_emb"][user_ids]
    ie = params["item_emb"][item_ids]
    ub = params["user_bias"][user_ids].squeeze()
    ib = params["item_bias"][item_ids].squeeze()
    return params["global_bias"][0] + ub + ib + jnp.sum(ue * ie, axis=1)


if __name__ == "__main__":
    NUM_USERS, NUM_ITEMS, NUM_FACTORS, BATCH = 64, 96, 20, 300

    key = jax.random.PRNGKey(0)
    k_params, k_ub, k_ib, k_gb, k_uid, k_iid = jax.random.split(key, 6)
    params = init_params(k_params, NUM_USERS, NUM_ITEMS, NUM_FACTORS)
    # Non-zero biases so the fused-bias path is actually exercised.
    params["user_bias"] = 0.05 * jax.random.normal(k_ub, (NUM_USERS, 1), jnp.float32)
    params["item_bias"] = 0.05 * jax.random.normal(k_ib, (NUM_ITEMS, 1), jnp.float32)
    params["global_bias"] = 0.1 * jax.random.normal(k_gb, (1,), jnp.float32)

    user_ids = jax.random.randint(k_uid, (BATCH,), 0, NUM_USERS, dtype=jnp.int32)
    item_ids = jax.random.randint(k_iid, (BATCH,), 0, NUM_ITEMS, dtype=jnp.int32)

    ref = reference_forward(user_ids, item_ids, params)

    # Default bf16-table path (MXU-native); exercises the multi-tile lane-dense grid.
    pred_bf16 = jax.block_until_ready(
        matrix_factorization_forward(user_ids, item_ids, params))
    assert pred_bf16.shape == (BATCH,)
    assert jnp.allclose(pred_bf16, ref, atol=2e-2, rtol=2e-2), (pred_bf16, ref)

    # float32 debug path: tight tolerance against the float32 reference.
    pred_f32 = jax.block_until_ready(
        matrix_factorization_forward(user_ids, item_ids, params,
                                     tile_b=128, table_dtype=jnp.float32))
    assert pred_f32.shape == (BATCH,)
    assert jnp.allclose(pred_f32, ref, atol=1e-5, rtol=1e-5), (pred_f32, ref)

    print("KERNEL_OK")
</pallas_src>

<mosaic_0001>
module attributes {stable_mosaic.version = 11 : i64} {
  func.func @mf_kernel(%arg0: i32, %arg1: memref<1x2x128xi32, #tpu.memory_space<vmem>>, %arg2: memref<22x128xbf16, #tpu.memory_space<vmem>>, %arg3: memref<22x128xbf16, #tpu.memory_space<vmem>>, %arg4: memref<1x1x128xf32, #tpu.memory_space<vmem>>) attributes {dimension_semantics = [#tpu.dimension_semantics<parallel>], iteration_bounds = array<i64: 3>, scalar_prefetch = 0 : i64, scratch_operands = 0 : i64, tpu.core_type = #tpu.core_type<tc>, window_params = [{transform_indices = @transform_0, window_bounds = array<i64: 1, 2, 128>}, {pipeline_mode = #tpu.pipeline_mode<synchronous>, transform_indices = @transform_1, window_bounds = array<i64: 22, 128>}, {pipeline_mode = #tpu.pipeline_mode<synchronous>, transform_indices = @transform_2, window_bounds = array<i64: 22, 128>}, {transform_indices = @transform_3, window_bounds = array<i64: 1, 1, 128>}]} {
    %c0 = arith.constant 0 : index
    %c0_0 = arith.constant 0 : index
    %c0_1 = arith.constant 0 : index
    %0 = vector.load %arg1[%c0, %c0_0, %c0_1] : memref<1x2x128xi32, #tpu.memory_space<vmem>>, vector<1x2x128xi32>
    %1 = vector.shape_cast %0 : vector<1x2x128xi32> to vector<2x128xi32>
    %2 = vector.extract_strided_slice %1 {offsets = [0, 0], sizes = [1, 128], strides = [1, 1]} : vector<2x128xi32> to vector<1x128xi32>
    %3 = vector.extract_strided_slice %1 {offsets = [1, 0], sizes = [1, 128], strides = [1, 1]} : vector<2x128xi32> to vector<1x128xi32>
    %4 = tpu.iota {dimensions = array<i32: 0>} : vector<128x128xi32>
    %5 = vector.broadcast %2 : vector<1x128xi32> to vector<128x128xi32>
    %6 = arith.cmpi eq, %4, %5 : vector<128x128xi32>
    %7 = arith.extui %6 : vector<128x128xi1> to vector<128x128xi32>
    %8 = arith.sitofp %7 : vector<128x128xi32> to vector<128x128xf32>
    %9 = arith.truncf %8 : vector<128x128xf32> to vector<128x128xbf16>
    %10 = tpu.iota {dimensions = array<i32: 0>} : vector<128x128xi32>
    %11 = vector.broadcast %3 : vector<1x128xi32> to vector<128x128xi32>
    %12 = arith.cmpi eq, %10, %11 : vector<128x128xi32>
    %13 = arith.extui %12 : vector<128x128xi1> to vector<128x128xi32>
    %14 = arith.sitofp %13 : vector<128x128xi32> to vector<128x128xf32>
    %15 = arith.truncf %14 : vector<128x128xf32> to vector<128x128xbf16>
    %c0_2 = arith.constant 0 : index
    %c0_3 = arith.constant 0 : index
    %16 = vector.load %arg2[%c0_2, %c0_3] : memref<22x128xbf16, #tpu.memory_space<vmem>>, vector<22x128xbf16>
    %cst = arith.constant dense<0.000000e+00> : vector<22x128xf32>
    %17 = tpu.matmul %16, %9, %cst {dimension_numbers = #tpu.dot_dimension_numbers<[1], [0], [0], [1], [0, 0, 1, 1], [], []>} : vector<22x128xbf16>, vector<128x128xbf16>, vector<22x128xf32> -> vector<22x128xf32>
    %c0_4 = arith.constant 0 : index
    %c0_5 = arith.constant 0 : index
    %18 = vector.load %arg3[%c0_4, %c0_5] : memref<22x128xbf16, #tpu.memory_space<vmem>>, vector<22x128xbf16>
    %cst_6 = arith.constant dense<0.000000e+00> : vector<22x128xf32>
    %19 = tpu.matmul %18, %15, %cst_6 {dimension_numbers = #tpu.dot_dimension_numbers<[1], [0], [0], [1], [0, 0, 1, 1], [], []>} : vector<22x128xbf16>, vector<128x128xbf16>, vector<22x128xf32> -> vector<22x128xf32>
    %20 = arith.mulf %17, %19 : vector<22x128xf32>
    %cst_7 = arith.constant dense<0.000000e+00> : vector<128xf32>
    %21 = vector.multi_reduction <add>, %20, %cst_7 [0] : vector<22x128xf32> to vector<128xf32>
    %22 = vector.shape_cast %21 : vector<128xf32> to vector<1x128xf32>
    %c0_8 = arith.constant 0 : index
    %c0_9 = arith.constant 0 : index
    %c0_10 = arith.constant 0 : index
    %23 = vector.load %arg4[%c0_8, %c0_9, %c0_10] : memref<1x1x128xf32, #tpu.memory_space<vmem>>, vector<1x1x128xf32>
    %24 = vector.shape_cast %23 : vector<1x1x128xf32> to vector<1x128xf32>
    %25 = vector.shape_cast %22 : vector<1x128xf32> to vector<1x1x128xf32>
    tpu.vector_store %arg4[%c0_8, %c0_9, %c0_10], %25 {strides = array<i32>} : memref<1x1x128xf32, #tpu.memory_space<vmem>>, vector<1x1x128xf32>,
    return
  }
  func.func @transform_0(%arg0: i32) -> (i32, i32, i32) {
    %c0_i32 = arith.constant 0 : i32
    %c0_i32_0 = arith.constant 0 : i32
    %c0_i32_1 = arith.constant 0 : i32
    return %arg0, %c0_i32, %c0_i32_0 : i32, i32, i32
  }
  func.func @transform_1(%arg0: i32) -> (i32, i32) {
    %c0_i32 = arith.constant 0 : i32
    %c0_i32_0 = arith.constant 0 : i32
    %c0_i32_1 = arith.constant 0 : i32
    return %c0_i32, %c0_i32_0 : i32, i32
  }
  func.func @transform_2(%arg0: i32) -> (i32, i32) {
    %c0_i32 = arith.constant 0 : i32
    %c0_i32_0 = arith.constant 0 : i32
    %c0_i32_1 = arith.constant 0 : i32
    return %c0_i32, %c0_i32_0 : i32, i32
  }
  func.func @transform_3(%arg0: i32) -> (i32, i32, i32) {
    %c0_i32 = arith.constant 0 : i32
    %c0_i32_0 = arith.constant 0 : i32
    %c0_i32_1 = arith.constant 0 : i32
    return %arg0, %c0_i32, %c0_i32_0 : i32, i32, i32
  }
}

</mosaic_0001>

<bundles_post_ra>
// kernel: tpu_custom_call.1
= control target key start
LH: loop header
LB: loop body
LE: loop exit
PB: predicated region body
PF: predicated region fallthrough
CT: control target
= control target key end

     0   :  { %8 = vsyncpa [#allocation3], 0  ;;  %s1117_s0 = inlined_call_operand.hbm [shape: s32[3,2,128], index: 0, kind: input, shape index: {}]   ;;  %s1118_s1 = inlined_call_operand.hbm [shape: bf16[22,128], index: 1, kind: input, shape index: {}]   ;;  %s1119_s2 = inlined_call_operand.hbm [shape: bf16[22,128], index: 2, kind: input, shape index: {}]   ;;  %s1120_s3 = inlined_call_operand.hbm [shape: f32[3,1,128], index: 3, kind: output, shape index: {}]  }
   0x1   :  { %10 = vsyncpa [#allocation3 + $0x1], 0 }
   0x2   :  { %11 = vsyncpa [#allocation6], 0 }
   0x3   :  { %12 = vsyncpa [#allocation4], 0 }
   0x4   :  { %14 = vsyncpa [#allocation4 + $0x1], 0  ;;  %s886_s12 = smov 0   ;;  %s888_s13 = smov 0  }
   0x5   :  { %s890_s14 = smov 0   ;;  %s892_s15 = smov 0  }
   0x6 LB: > { %s130_s18 = sshll.u32 %s1118_s1, 4  ;;  %s910_s19 = sadd.s32 4294967295, %s859_s15   ;;  %s859_s15 = sphi %s892_s15, %s1130_s15   ;;  %s855_s14 = sphi %s890_s14, %s1129_s14   ;;  %s851_s13 = sphi %s888_s13, %s1128_s13   ;;  %s847_s12 = sphi %s886_s12, %s1127_s12   ;;  %s131_s18 = int_to_ptr.hbm [resolvable:$true] %s130_s18 }
   0x7   : > { %p527_p0 = scmp.ge.s32.totalorder %s859_s15, 1  ;;  %p41_p1 = scmp.eq.s32.totalorder %s910_s19, 0 }
   0x8   : > { %p119_p2 = scmp.lt.s32.totalorder %s859_s15, 4  ;;  %s861_s21 = smov [#allocation5]  }
   0x9   : > { %s132_s22 = sshll.u32 %s861_s21, 4  ;;  %s144_s25 = sshll.u32 %s1119_s2, 4  ;;  %s133_s22 = int_to_ptr.vmem [resolvable:$true] %s132_s22  ;;  %s145_s25 = int_to_ptr.hbm [resolvable:$true] %s144_s25 }
   0xa   : > { %p915_p3 = pnand %p527_p0, %p119_p2  ;;  %s862_s26 = smov [#allocation7]  }
   0xb   : > { %s146_s27 = sshll.u32 %s862_s26, 4  ;;  %s863_s28 = smov 64   ;;  %s147_s27 = int_to_ptr.vmem [resolvable:$true] %s146_s27 }
   0xc   : > { %p641_p4 = pneg %p915_p3  ;;  %s864_s29 = smov 4  }
   0xd   : > { %s526_s30 = sadd.s32 4294967294, %s859_s15   ;;  %s928_s4 = sadd.s32 1, %s859_s15  }
   0xe   : > { %p642_p5 = pnand %p641_p4, %p41_p1  ;;  %s24_s5 = ssub.s32 %s859_s15, %s928_s4 }
   0xf   : > { %s27_s6 = sadd.s32 1, %s855_s14  ;;  %p25_p6 = scmp.eq.s32.totalorder %s24_s5, 0 }
  0x10   : > { %644 = dma.hbm_to_vmem [thread:$0]  (!%p642_p5), %s131_s18, 192, %s133_s22, [#allocation6], %s863_s28, %s863_s28, %s864_s29  }
  0x11   : > { %647 = dma.hbm_to_vmem [thread:$0]  (!%p642_p5), %s145_s25, 192, %s147_s27, [#allocation6], %s863_s28, %s863_s28, %s864_s29  }
  0x12   : > { %p34_p7 = scmp.ne.s32.totalorder %s855_s14, %s851_s13  ;;  %p35_p8 = scmp.eq.s32.totalorder %s859_s15, 0 }
  0x13   : > { %p40_p9 = scmp.ne.s32.totalorder %s851_s13, %s847_s12  ;;  %p106_p12 = scmp.eq.s32.totalorder %s910_s19, 2 }
  0x14   : > { %s939_s7 = scalar_select %p25_p6, %s855_s14, %s27_s6  }
  0x15   : > { %p941_p10 = por %p35_p8, %p34_p7  ;;  %p947_p11 = por %p41_p1, %p40_p9 }
  0x16   : > { %p112_p13 = scmp.eq.s32.totalorder %s526_s30, 2  ;;  %p658_p0 = scmp.lt.s32.totalorder %s859_s15, 3 }
  0x17   : > { %s160_s10 = sand.u32 1, %s855_s14   ;;  %p954_p2 = por %p106_p12, %p34_p7 }
  0x18   : > { %p958_p4 = por %p112_p13, %p40_p9  ;;  %s531_s17 = sshll.u32 %s160_s10, 1 }
  0x19   : > { %s532_s18 = sshll.u32 %s859_s15, 1  ;;  %s164_s24 = scalar_lea.vmem [#allocation2], %s531_s17 }
  0x1a   : > { %s168_s23 = scalar_lea.hbm %s1117_s0, %s532_s18  ;;  %s172_s25 = sshll.u32 %s164_s24, 4  ;;  %s173_s25 = int_to_ptr.vmem [resolvable:$true] %s172_s25 }
  0x1b   : > { %s170_s26 = sshll.u32 %s168_s23, 4  ;;  %p968_p5 = pnand %p658_p0, %p941_p10  ;;  %s171_s26 = int_to_ptr.hbm [resolvable:$true] %s170_s26 }
  0x1c   : > { %s161_s28 = scalar_lea.sflag [#allocation3], %s160_s10  ;;  %s759_s29 = sshra.s32 %s171_s26, 4  ;;  %s760_s29 = int_to_ptr.hbm [resolvable:$true] %s759_s29 }
  0x1d   : > { %s761_s30 = scalar_lea.hbm %s760_s29, 2  ;;  %p763_p7 = pneg %p968_p5 }
  0x1e   : > { %p762_p6 = scmp.ne.s32.totalorder %s760_s29, %s761_s30  ;;  %s766_s17 = scalar_lea.hbm %s1117_s0, 6 }
  0x1f   : > { %p767_p10 = scmp.lt.s32.totalorder %s760_s29, %s1117_s0  ;;  %p768_p12 = scmp.lt.s32.totalorder %s766_s17, %s761_s30 }
  0x20   : > { %p764_p8 = pnand %p763_p7, %p762_p6 }
  0x21   : > { %p769_p13 = por %p768_p12, %p767_p10 }
  0x22   : > { %p765_p9 = pneg %p764_p8 }
  0x24   : > { %p770_p0 = pnand %p769_p13, %p765_p9 }
  0x26   : > { %773 = shalt.err (!%p770_p0)
}
  0x27   : > { %651 = dma.hbm_to_vmem [thread:$0]  (!%p968_p5), %s171_s26, 32, %s173_s25, %s161_s28  }
  0x28   : > { %181 = sbr.rel (%p915_p3) target bundleno = 243 (0xf3), region = 32  ;;  %s985_s10 = sand.u32 (!%p915_p3), 1, %s851_s13  }
  0x29   : > { %s534_s21 = sshll.u32 (!%p915_p3), %s985_s10, 1  ;;  %s184_s22 = scalar_lea.sflag (!%p915_p3), [#allocation3], %s985_s10 }
  0x2a   : > { %s187_s23 = scalar_lea.vmem (!%p915_p3), [#allocation2], %s534_s21 }
  0x2d   : > { %834 = dma.done.wait (%p947_p11), %s184_s22, 32  }
  0x2e   : > { %836 = vsyncadd (%p947_p11), %s184_s22, 4294967264 }
  0x2f   : > { %838 = dma.done.wait (%p41_p1), [#allocation6], 384  }
  0x30   : > { %840 = vsyncadd (%p41_p1), [#allocation6], 4294966912  ;;  %v221_v0 = vlaneseq  ;;  %v220_v4 = vld [vmem:[%s187_s23] sm:$0x3]  ;;  %v865_v11 = vmov 1.0|1.0   ;;  %s437_s24 = scalar_lea.hbm %s1120_s3, %s910_s19 }
  0x31   : > { %v1003_v7 = vperm.slane %v220_v4, 0  ;;  %v1005_v8 = vperm.slane %v220_v4, 1  ;;  %v354_v21 = vld [vmem:[#allocation5 + $0x8] sm:$0x7]  ;;  %v385_v22 = vld [vmem:[#allocation7 + $0x8] sm:$0x7] }
  0x32   : > { %v997_v1 = vshrl.u32 %v221_v0, 7  ;;  %v360_v23 = vunpack.c.l.b16 %v354_v21  ;;  %v391_v24 = vunpack.c.l.b16 %v385_v22  ;;  %v611_v25 = vld [vmem:[#allocation5] sm:$0xff]  ;;  %v612_v27 = vld [vmem:[#allocation7] sm:$0xff]  ;;  %s219_s25 = scalar_lea.vmem [#allocation8], %s985_s10  ;;  %s441_s27 = sshll.u32 %s437_s24, 4  ;;  %s442_s27 = int_to_ptr.hbm [resolvable:$true] %s441_s27 }
  0x33   : > { %s439_s26 = sshll.u32 %s219_s25, 4  ;;  %s429_s28 = scalar_lea.sflag [#allocation4], %s985_s10  ;;  %s440_s26 = int_to_ptr.vmem [resolvable:$true] %s439_s26 }
  0x34   : > { %v236_v2 = vadd.s32 112, %v997_v1  ;;  %v237_v3 = vadd.s32 120, %v997_v1  ;;  %v234_v5 = vadd.s32 96, %v997_v1  ;;  %v235_v6 = vadd.s32 104, %v997_v1  ;;  %s803_s29 = sshra.s32 %s442_s27, 4  ;;  %s809_s19 = scalar_lea.hbm %s1120_s3, 3  ;;  %s804_s29 = int_to_ptr.hbm [resolvable:$true] %s803_s29 }
  0x35   : > { %v232_v9 = vadd.s32 80, %v997_v1  ;;  %v233_v10 = vadd.s32 88, %v997_v1  ;;  %v230_v12 = vadd.s32 64, %v997_v1  ;;  %v231_v13 = vadd.s32 72, %v997_v1  ;;  %s805_s30 = scalar_lea.hbm %s804_s29, 1  ;;  %p810_p5 = scmp.lt.s32.totalorder %s804_s29, %s1120_s3 }
  0x36   : > { %vm253_vm0 = vcmp.eq.s32.totalorder %v236_v2, %v1003_v7  ;;  %vm254_vm1 = vcmp.eq.s32.totalorder %v237_v3, %v1003_v7  ;;  %vm310_vm2 = vcmp.eq.s32.totalorder %v236_v2, %v1005_v8  ;;  %vm311_vm3 = vcmp.eq.s32.totalorder %v237_v3, %v1005_v8  ;;  %p806_p1 = scmp.ne.s32.totalorder %s804_s29, %s805_s30  ;;  %p811_p6 = scmp.lt.s32.totalorder %s809_s19, %s805_s30 }
  0x37   : > { %vm573_vm4 = vmpackc.low %vm254_vm1, %vm253_vm0  ;;  %vm251_vm5 = vcmp.eq.s32.totalorder %v234_v5, %v1003_v7  ;;  %vm252_vm6 = vcmp.eq.s32.totalorder %v235_v6, %v1003_v7  ;;  %vm308_vm7 = vcmp.eq.s32.totalorder %v234_v5, %v1005_v8  ;;  %vm309_vm8 = vcmp.eq.s32.totalorder %v235_v6, %v1005_v8 }
  0x38   : > { %574 = vmatpush.bf16.msk.msra.mxu0 %vm573_vm4, %v865_v11  ;;  %613 = vmatpush.bf16.msk.msra.mxu2 %vm573_vm4, %v865_v11  ;;  %vm593_vm9 = vmpackc.low %vm311_vm3, %vm310_vm2  ;;  %vm249_vm12 = vcmp.eq.s32.totalorder %v232_v9, %v1003_v7  ;;  %vm250_vm13 = vcmp.eq.s32.totalorder %v233_v10, %v1003_v7  ;;  %vm306_vm14 = vcmp.eq.s32.totalorder %v232_v9, %v1005_v8  ;;  %v228_v14 = vadd.s32 48, %v997_v1  ;;  %p807_p3 = pnand %p806_p1, %p954_p2  ;;  %p812_p7 = por %p811_p6, %p810_p5 }
  0x39   : > { %594 = vmatpush.bf16.msk.msra.mxu1 %vm593_vm9, %v865_v11  ;;  %621 = vmatpush.bf16.msk.msra.mxu3 %vm593_vm9, %v865_v11  ;;  %vm575_vm10 = vmpackc.low %vm252_vm6, %vm251_vm5  ;;  %vm307_vm15 = vcmp.eq.s32.totalorder %v233_v10, %v1005_v8  ;;  %vm247_vm2 = vcmp.eq.s32.totalorder %v230_v12, %v1003_v7  ;;  %vm248_vm3 = vcmp.eq.s32.totalorder %v231_v13, %v1003_v7  ;;  %v229_v15 = vadd.s32 56, %v997_v1 }
  0x3a   : > { %vm595_vm11 = vmpackc.low %vm309_vm8, %vm308_vm7  ;;  %vm304_vm4 = vcmp.eq.s32.totalorder %v230_v12, %v1005_v8  ;;  %vm305_vm5 = vcmp.eq.s32.totalorder %v231_v13, %v1005_v8  ;;  %vm245_vm8 = vcmp.eq.s32.totalorder %v228_v14, %v1003_v7  ;;  %v226_v16 = vadd.s32 32, %v997_v1  ;;  %p808_p11 = pneg %p807_p3 }
  0x3b   : > { %vm577_vm0 = vmpackc.low %vm250_vm13, %vm249_vm12  ;;  %vm246_vm9 = vcmp.eq.s32.totalorder %v229_v15, %v1003_v7  ;;  %v227_v17 = vadd.s32 40, %v997_v1  ;;  %v224_v18 = vadd.s32 16, %v997_v1  ;;  %v225_v19 = vadd.s32 24, %v997_v1 }
  0x3c   : > { %576 = vmatpush.bf16.msk.msra.mxu0 %vm575_vm10, %v865_v11  ;;  %614 = vmatpush.bf16.msk.msra.mxu2 %vm575_vm10, %v865_v11  ;;  %vm597_vm1 = vmpackc.low %vm307_vm15, %vm306_vm14  ;;  %vm302_vm10 = vcmp.eq.s32.totalorder %v228_v14, %v1005_v8  ;;  %vm243_vm14 = vcmp.eq.s32.totalorder %v226_v16, %v1003_v7  ;;  %v223_v20 = vadd.s32 8, %v997_v1  ;;  %v362_v26 = vpack.c.b16 %v360_v23, %v360_v23  ;;  %p813_p8 = pnand %p812_p7, %p808_p11 }
  0x3d   : > { %596 = vmatpush.bf16.msk.msra.mxu1 %vm595_vm11, %v865_v11  ;;  %622 = vmatpush.bf16.msk.msra.mxu3 %vm595_vm11, %v865_v11  ;;  %vm579_vm6 = vmpackc.low %vm248_vm3, %vm247_vm2  ;;  %vm303_vm11 = vcmp.eq.s32.totalorder %v229_v15, %v1005_v8  ;;  %vm244_vm15 = vcmp.eq.s32.totalorder %v227_v17, %v1003_v7  ;;  %v393_v28 = vpack.c.b16 %v391_v24, %v391_v24 }
  0x3e   : > { %vm599_vm7 = vmpackc.low %vm305_vm5, %vm304_vm4  ;;  %vm241_vm4 = vcmp.eq.s32.totalorder %v224_v18, %v1003_v7  ;;  %vm242_vm5 = vcmp.eq.s32.totalorder %v225_v19, %v1003_v7 }
  0x3f   : > { %vm581_vm12 = vmpackc.low %vm246_vm9, %vm245_vm8 }
  0x40   : > { %578 = vmatpush.bf16.msk.msra.mxu0 %vm577_vm0, %v865_v11  ;;  %615 = vmatpush.bf16.msk.msra.mxu2 %vm577_vm0, %v865_v11  ;;  %vm601_vm13 = vmpackc.low %vm303_vm11, %vm302_vm10  ;;  %vm300_vm0 = vcmp.eq.s32.totalorder %v226_v16, %v1005_v8  ;;  %vm239_vm10 = vcmp.eq.s32.totalorder %v997_v1, %v1003_v7  ;;  %vm240_vm11 = vcmp.eq.s32.totalorder %v223_v20, %v1003_v7 }
  0x41   : > { %598 = vmatpush.bf16.msk.msra.mxu1 %vm597_vm1, %v865_v11  ;;  %623 = vmatpush.bf16.msk.msra.mxu3 %vm597_vm1, %v865_v11  ;;  %vm301_vm1 = vcmp.eq.s32.totalorder %v227_v17, %v1005_v8  ;;  %vm583_vm2 = vmpackc.low %vm244_vm15, %vm243_vm14 }
  0x42   : > { %vm603_vm3 = vmpackc.low %vm301_vm1, %vm300_vm0  ;;  %vm418_vm0 = vcmask 1045504  }
  0x43   : > { %vm585_vm8 = vmpackc.low %vm242_vm5, %vm241_vm4 }
  0x44   : > { %580 = vmatpush.bf16.msk.msra.mxu0 %vm579_vm6, %v865_v11  ;;  %616 = vmatpush.bf16.msk.msra.mxu2 %vm579_vm6, %v865_v11  ;;  %vm298_vm6 = vcmp.eq.s32.totalorder %v224_v18, %v1005_v8  ;;  %vm587_vm14 = vmpackc.low %vm240_vm11, %vm239_vm10 }
  0x45   : > { %600 = vmatpush.bf16.msk.msra.mxu1 %vm599_vm7, %v865_v11  ;;  %624 = vmatpush.bf16.msk.msra.mxu3 %vm599_vm7, %v865_v11  ;;  %vm299_vm7 = vcmp.eq.s32.totalorder %v225_v19, %v1005_v8 }
  0x46   : > { %vm605_vm9 = vmpackc.low %vm299_vm7, %vm298_vm6 }
  0x48   : > { %582 = vmatpush.bf16.msk.msra.mxu0 %vm581_vm12, %v865_v11  ;;  %617 = vmatpush.bf16.msk.msra.mxu2 %vm581_vm12, %v865_v11  ;;  %vm296_vm12 = vcmp.eq.s32.totalorder %v997_v1, %v1005_v8 }
  0x49   : > { %602 = vmatpush.bf16.msk.msra.mxu1 %vm601_vm13, %v865_v11  ;;  %625 = vmatpush.bf16.msk.msra.mxu3 %vm601_vm13, %v865_v11  ;;  %vm297_vm13 = vcmp.eq.s32.totalorder %v223_v20, %v1005_v8 }
  0x4a   : > { %vm607_vm15 = vmpackc.low %vm297_vm13, %vm296_vm12 }
  0x4c   : > { %584 = vmatpush.bf16.msk.msra.mxu0 %vm583_vm2, %v865_v11  ;;  %618 = vmatpush.bf16.msk.msra.mxu2 %vm583_vm2, %v865_v11 }
  0x4d   : > { %604 = vmatpush.bf16.msk.msra.mxu1 %vm603_vm3, %v865_v11  ;;  %626 = vmatpush.bf16.msk.msra.mxu3 %vm603_vm3, %v865_v11 }
  0x50   : > { %586 = vmatpush.bf16.msk.msra.mxu0 %vm585_vm8, %v865_v11  ;;  %619 = vmatpush.bf16.msk.msra.mxu2 %vm585_vm8, %v865_v11 }
  0x51   : > { %606 = vmatpush.bf16.msk.msra.mxu1 %vm605_vm9, %v865_v11  ;;  %627 = vmatpush.bf16.msk.msra.mxu3 %vm605_vm9, %v865_v11 }
  0x54   : > { %588 = vmatpush.bf16.msk.msra.mxu0 %vm587_vm14, %v865_v11  ;;  %620 = vmatpush.bf16.msk.msra.mxu2 %vm587_vm14, %v865_v11 }
  0x55   : > { %608 = vmatpush.bf16.msk.msra.mxu1 %vm607_vm15, %v865_v11  ;;  %628 = vmatpush.bf16.msk.msra.mxu3 %vm607_vm15, %v865_v11 }
  0x57   : > { %373 = vmatmul.bf16.vlgmr.msra.gmra.mxu0 %v611_v25  ;;  %378 = vmatmul.bf16.vlgmr.msra.gmra.mxu2 %v362_v26 }
  0x58   : > { %404 = vmatmul.bf16.vlgmr.msra.gmra.mxu1 %v612_v27  ;;  %409 = vmatmul.bf16.vlgmr.msra.gmra.mxu3 %v393_v28 }
  0xd4   : > { %v374_v29 = vpop.f32.mrf.mxu0 }
  0xd5   : > { %v405_v30 = vpop.f32.mrf.mxu1 }
  0xd6   : > { %v414_v36 = vmul.f32 %v405_v30, %v374_v29 }
  0xda   : > { %v379_v31 = vpop.f32.mrf.mxu2 }
  0xdb   : > { %v410_v32 = vpop.f32.mrf.mxu3 }
  0xdc   : > { %v416_v33 = vmul.f32 %v410_v32, %v379_v31  ;;  %v376_v34 = vpop.f32.mrf.mxu0 }
  0xdd   : > { %v407_v35 = vpop.f32.mrf.mxu1 }
  0xde   : > { %v415_v37 = vmul.f32 %v407_v35, %v376_v34  ;;  %v419_v38 = vsel %vm418_vm0, %v416_v33, 0.0 }
  0xe0   : > { %v417_v39 = vadd.f32 %v415_v37, %v414_v36 }
  0xe2   : > { %v420_v40 = vadd.f32 %v419_v38, %v417_v39  ;;  %v381_v41 = vpop.f32.mrf.mxu2 }
  0xe3   : > { %v412_v42 = vpop.f32.mrf.mxu3 }
  0xe4   : > { %v421_v43 = vrot.slane %v420_v40, 4 }
  0xe6   : > { %v422_v44 = vadd.f32 %v421_v43, %v420_v40 }
  0xe8   : > { %v423_v45 = vrot.slane %v422_v44, 2 }
  0xea   : > { %v424_v46 = vadd.f32 %v423_v45, %v422_v44 }
  0xec   : > { %v425_v47 = vrot.slane %v424_v46, 1 }
  0xee   : > { %v426_v48 = vadd.f32 %v425_v47, %v424_v46 }
  0xf0   : > { %427 = vst [vmem:[%s219_s25] sm:$0x1] %v426_v48 }
  0xf1   : > { %816 = shalt.err (!%p813_p8)
}
  0xf2   : > { %639 = dma.vmem_to_hbm [thread:$0]  (%p954_p2), %s440_s26, 16, %s442_s27, %s429_s28  }
  0xf3 PF: > { %p661_p9 = scmp.ge.s32.totalorder %s859_s15, 2  ;;  %s453_s8 = sand.u32 1, %s847_s12  }
  0xf4   : > { %s454_s10 = scalar_lea.sflag [#allocation4], %s453_s8 }
  0xf5   : > { %p653_p10 = pnand %p661_p9, %p958_p4 }
  0xf7   : > { %p654_p12 = pneg %p653_p10 }
  0xf9   : > { %842 = dma.done.wait (%p654_p12), %s454_s10, 16  }
  0xfa   : > { %844 = vsyncadd (%p654_p12), %s454_s10, 4294967280  ;;  %p17_p13 = scmp.ge.s32.totalorder %s928_s4, 5   ;;  %s1127_s12 = smov %s851_s13 }
  0xfb   : > { %s1128_s13 = smov %s855_s14  ;;  %s1129_s14 = smov %s939_s7 }
  0xfc   : > { %s1130_s15 = smov %s928_s4  ;;  %19 = sbr.rel (!%p17_p13) target bundleno = 6 (0x6), region = 85 }
 0x101   :  { %459 = vsyncpa [#allocation3], 1 }
 0x102   :  { %461 = vsyncpa [#allocation3 + $0x1], 1 }
 0x103   :  { %462 = vsyncpa [#allocation6], 1 }
 0x104   :  { %463 = vsyncpa [#allocation4], 1 }
 0x105   :  { %465 = vsyncpa [#allocation4 + $0x1], 1 }

</bundles_post_ra>
